<compile_context>
chip_gen: v7x
topology: tpu7x:2x2x1
jax: 0.10.0
libtpu: 0.0.40
codegen_flags: <defaults>
</compile_context>

<pallas_src>
import functools

import jax
import jax.numpy as jnp
from jax import lax
from jax.experimental import pallas as pl
from jax.experimental.pallas import tpu as pltpu


def mean_pooler_kernel(h_ref, m_ref, w1_ref, b1_ref, w2_ref, b2_ref,
                       o_ref, acc_ref, msum_ref, *,
                       sqrt, seq_len, seq_tile, has_tail):
    s = pl.program_id(1)

    @pl.when(s == 0)
    def _():
        acc_ref[...] = jnp.zeros_like(acc_ref)
        msum_ref[...] = jnp.zeros_like(msum_ref)

    h = h_ref[...]                       # [TB, TS, D]  native dtype (no upcast)
    m = m_ref[...]                       # [TB, TS]     f32 0/1

    if has_tail:
        # The last S chunk reads past S; the un-DMA'd tail of the VMEM buffer is
        # stale garbage.  Select (not multiply) so 0 * NaN cannot propagate.
        pos = s * seq_tile + lax.broadcasted_iota(jnp.int32, (1, seq_tile), 1)
        valid = pos < seq_len            # [1, TS]
        m = jnp.where(valid, m, 0.0)
        h = jnp.where(valid[:, :, None], h, jnp.zeros_like(h))

    # Masked sum over this sequence chunk on the MXU:
    #   [TB, 1, TS] x [TB, TS, D] -> [TB, 1, D], accumulate in f32.
    prec = (lax.Precision.HIGHEST if h.dtype == jnp.float32
            else lax.Precision.DEFAULT)
    partial_sum = jnp.einsum(
        'bqs,bsd->bqd', m[:, None, :].astype(h.dtype), h,
        preferred_element_type=jnp.float32, precision=prec)
    acc_ref[...] += partial_sum[:, 0, :]
    msum_ref[...] += jnp.sum(m, axis=1, keepdims=True)

    @pl.when(s == pl.num_programs(1) - 1)
    def _():
        msum = msum_ref[...]                                   # [TB, 1]
        inv = lax.rsqrt(msum) if sqrt else 1.0 / msum
        # Guard all-zero-mask rows (padded / partial-block garbage rows); the
        # reference would produce inf/nan there, real rows are untouched.
        inv = jnp.where(msum > 0.0, inv, 0.0)
        pooled = acc_ref[...] * inv                            # [TB, D] f32

        # dense1 -> ReLU -> dropout(eval=identity) -> dense2.
        # Weights were pre-transposed to (in, out) in the wrapper -> plain x @ W.
        h1 = jnp.dot(pooled.astype(w1_ref.dtype), w1_ref[...],
                     preferred_element_type=jnp.float32) + b1_ref[...]
        h1 = jnp.maximum(h1, 0.0)
        # TODO(synk): training-mode dropout would need pltpu.prng_seed +
        # pltpu.prng_random_bits; eval mode is identity.
        y = jnp.dot(h1.astype(w2_ref.dtype), w2_ref[...],
                    preferred_element_type=jnp.float32) + b2_ref[...]
        o_ref[...] = y.astype(o_ref.dtype)


def _vmem_budget_bytes():
    """Generation-aware scoped-VMEM budget (~5/8 of per-core capacity)."""
    cap = 64 * 1024 * 1024                       # conservative default (v7x per-TC)
    try:
        cap = int(pltpu.get_tpu_info().vmem_capacity_bytes)
    except Exception:
        pass
    return int(min((cap * 5) // 8, 100 * 1024 * 1024))


def _derive_tiles(B, S, D, hbytes, wbytes, batch_tile, seq_tile, budget,
                  max_seq_tile=512):
    TB = max(1, min(B, batch_tile))
    if seq_tile is None:
        # Resident bytes independent of the sequence tile: weights (budget two
        # buffers in case single-buffering is unavailable), biases, f32
        # accumulators, double-buffered output block.
        fixed = (2 * (2 * D * D * wbytes + 2 * D * 4)
                 + TB * D * 4 + TB * 4 + 2 * TB * D * hbytes)
        per_s = 2 * TB * D * hbytes + 2 * TB * 4     # double-buffered hidden + mask
        ts = max((budget - fixed) // per_s, 0)
        ts = min(int(ts), max_seq_tile)
        ts = (ts // 128) * 128
        seq_tile = max(ts, 128)
    TS = S if S <= seq_tile else seq_tile            # full S (no tiling) or 128-multiple
    return TB, TS


def mean_pooler(hidden_states, mask, w1, b1, w2, b2, *, sqrt=True,
                weight_dtype=jnp.bfloat16, batch_tile=8, seq_tile=None):
    """hidden_states: [B, S, D]; mask: [B, S] (0/1).  Returns [B, D]."""
    B, S, D = hidden_states.shape
    f32 = jnp.float32

    # Only tiny operands are copied/cast in the wrapper; hidden_states is
    # streamed by the kernel exactly as-is (no HBM pad/rewrite copy).
    mask_f = mask.astype(f32)                        # [B, S], lane-dense
    w1_t = w1.astype(weight_dtype).T                 # (in, out)
    w2_t = w2.astype(weight_dtype).T
    b1_r = b1.astype(f32).reshape(1, D)
    b2_r = b2.astype(f32).reshape(1, D)

    hbytes = jnp.dtype(hidden_states.dtype).itemsize
    wbytes = jnp.dtype(weight_dtype).itemsize
    budget = _vmem_budget_bytes()
    TB, TS = _derive_tiles(B, S, D, hbytes, wbytes, batch_tile, seq_tile, budget)
    # TODO(synk): for D >= 4096 on v7x (64 MiB VMEM) resident W1+W2 no longer
    # fit even single-buffered; split the tiny MLP finalize into a second
    # pallas_call (pooled [B, D] is small) or tile the dense over output-N.

    nb = pl.cdiv(B, TB)
    ns = pl.cdiv(S, TS)
    has_tail = (S % TS) != 0

    cost = pl.CostEstimate(
        flops=2 * B * S * D + 2 * (2 * B * D * D),
        transcendentals=0,
        bytes_accessed=(B * S * D * hbytes + B * S * 4
                        + 2 * D * D * wbytes + 2 * D * 4 + B * D * hbytes),
    )

    kernel = functools.partial(mean_pooler_kernel, sqrt=sqrt, seq_len=S,
                               seq_tile=TS, has_tail=has_tail)

    def call(weight_pipeline_mode):
        if weight_pipeline_mode is None:
            def w_spec(shape):
                return pl.BlockSpec(shape, lambda b, s: (0, 0))
        else:
            def w_spec(shape):
                return pl.BlockSpec(shape, lambda b, s: (0, 0),
                                    pipeline_mode=weight_pipeline_mode)
        return pl.pallas_call(
            kernel,
            out_shape=jax.ShapeDtypeStruct((B, D), hidden_states.dtype),
            grid_spec=pltpu.PrefetchScalarGridSpec(
                num_scalar_prefetch=0,
                grid=(nb, ns),
                in_specs=[
                    pl.BlockSpec((TB, TS, D), lambda b, s: (b, s, 0)),  # hidden chunk (streamed)
                    pl.BlockSpec((TB, TS), lambda b, s: (b, s)),        # mask chunk (streamed)
                    w_spec((D, D)),                                     # W1^T (resident)
                    w_spec((1, D)),                                     # b1
                    w_spec((D, D)),                                     # W2^T (resident)
                    w_spec((1, D)),                                     # b2
                ],
                out_specs=pl.BlockSpec((TB, D), lambda b, s: (b, 0)),
                scratch_shapes=[
                    pltpu.VMEM((TB, D), f32),   # masked-sum accumulator
                    pltpu.VMEM((TB, 1), f32),   # mask-count accumulator
                ],
            ),
            compiler_params=pltpu.CompilerParams(
                # Batch axis parallel (megacore / v7x second TC), S reduction
                # axis arbitrary (output + accumulators resident across it).
                dimension_semantics=("parallel", "arbitrary"),
                vmem_limit_bytes=budget,
            ),
            cost_estimate=cost,
        )(hidden_states, mask_f, w1_t, b1_r, w2_t, b2_r)

    try:
        # Grid-invariant weights: request single buffering (halves resident VMEM).
        return call(pl.Buffered(1))
    except Exception:
        # TODO(synk): jax build without BlockSpec.pipeline_mode / Buffered(1)
        # support; fall back to default double-buffered weight blocks.
        return call(None)


def reference_mean_pooler(hidden_states, mask, w1, b1, w2, b2, sqrt=True):
    m = mask.astype(jnp.float32)
    sums = jnp.einsum('bsd,bs->bd', hidden_states.astype(jnp.float32), m)
    div = jnp.sum(m, axis=1, keepdims=True)
    if sqrt:
        div = jnp.sqrt(div)
    pooled = sums / div
    h = jnp.maximum(pooled @ w1.T + b1, 0.0)
    return h @ w2.T + b2


if __name__ == "__main__":
    # Small shapes consistent with the module: batch=2, seq=8, d_model=32.
    B, S, D = 2, 8, 32
    key = jax.random.PRNGKey(0)
    k_x, k_w1, k_b1, k_w2, k_b2 = jax.random.split(key, 5)

    hidden_states = jax.random.normal(k_x, (B, S, D), dtype=jnp.float32)
    lengths = jnp.array([8, 5], dtype=jnp.int32)
    mask = (jnp.arange(S)[None, :] < lengths[:, None]).astype(jnp.int32)

    # PyTorch Linear layout: weight (out, in), bias (out,)
    scale = 1.0 / jnp.sqrt(D)
    w1 = jax.random.uniform(k_w1, (D, D), jnp.float32, -scale, scale)
    b1 = jax.random.uniform(k_b1, (D,), jnp.float32, -scale, scale)
    w2 = jax.random.uniform(k_w2, (D, D), jnp.float32, -scale, scale)
    b2 = jax.random.uniform(k_b2, (D,), jnp.float32, -scale, scale)

    out = mean_pooler(hidden_states, mask, w1, b1, w2, b2, sqrt=True)
    jax.block_until_ready(out)

    ref = reference_mean_pooler(hidden_states, mask, w1, b1, w2, b2, sqrt=True)
    assert out.shape == (B, D)
    # bf16 weights/activations in the dense layers vs f32 reference -> loose tolerance.
    assert jnp.allclose(out, ref, atol=5e-2, rtol=5e-2), "mismatch vs reference"

    print("KERNEL_OK")
</pallas_src>

<mosaic_0001>
module attributes {stable_mosaic.version = 11 : i64} {
  func.func @mean_pooler_kernel(%arg0: i32, %arg1: i32, %arg2: memref<2x8x32xf32, #tpu.memory_space<vmem>>, %arg3: memref<2x8xf32, #tpu.memory_space<vmem>>, %arg4: memref<32x32xbf16, #tpu.memory_space<vmem>>, %arg5: memref<1x32xf32, #tpu.memory_space<vmem>>, %arg6: memref<32x32xbf16, #tpu.memory_space<vmem>>, %arg7: memref<1x32xf32, #tpu.memory_space<vmem>>, %arg8: memref<2x32xf32, #tpu.memory_space<vmem>>, %arg9: memref<2x32xf32, #tpu.memory_space<vmem>>, %arg10: memref<2x1xf32, #tpu.memory_space<vmem>>) attributes {dimension_semantics = [#tpu.dimension_semantics<parallel>, #tpu.dimension_semantics<arbitrary>], iteration_bounds = array<i64: 1, 1>, scalar_prefetch = 0 : i64, scratch_operands = 2 : i64, tpu.core_type = #tpu.core_type<tc>, window_params = [{transform_indices = @transform_0, window_bounds = array<i64: 2, 8, 32>}, {transform_indices = @transform_1, window_bounds = array<i64: 2, 8>}, {pipeline_mode = #tpu.pipeline_mode<synchronous>, transform_indices = @transform_2, window_bounds = array<i64: 32, 32>}, {pipeline_mode = #tpu.pipeline_mode<synchronous>, transform_indices = @transform_3, window_bounds = array<i64: 1, 32>}, {pipeline_mode = #tpu.pipeline_mode<synchronous>, transform_indices = @transform_4, window_bounds = array<i64: 32, 32>}, {pipeline_mode = #tpu.pipeline_mode<synchronous>, transform_indices = @transform_5, window_bounds = array<i64: 1, 32>}, {transform_indices = @transform_6, window_bounds = array<i64: 2, 32>}]} {
    %c0_i32 = arith.constant 0 : i32
    %0 = arith.cmpi eq, %arg1, %c0_i32 : i32
    %1 = arith.extui %0 : i1 to i32
    %c0_i32_0 = arith.constant 0 : i32
    %2 = arith.cmpi ne, %1, %c0_i32_0 : i32
    scf.if %2 {
      %cst_16 = arith.constant 0.000000e+00 : f32
      %19 = vector.broadcast %cst_16 : f32 to vector<2x32xf32>
      %c0_17 = arith.constant 0 : index
      %c0_18 = arith.constant 0 : index
      %20 = vector.load %arg9[%c0_17, %c0_18] : memref<2x32xf32, #tpu.memory_space<vmem>>, vector<2x32xf32>
      tpu.vector_store %arg9[%c0_17, %c0_18], %19 {strides = array<i32>} : memref<2x32xf32, #tpu.memory_space<vmem>>, vector<2x32xf32>,
      %cst_19 = arith.constant 0.000000e+00 : f32
      %21 = vector.broadcast %cst_19 : f32 to vector<2x1xf32>
      %c0_20 = arith.constant 0 : index
      %c0_21 = arith.constant 0 : index
      %22 = vector.load %arg10[%c0_20, %c0_21] : memref<2x1xf32, #tpu.memory_space<vmem>>, vector<2x1xf32>
      tpu.vector_store %arg10[%c0_20, %c0_21], %21 {strides = array<i32>} : memref<2x1xf32, #tpu.memory_space<vmem>>, vector<2x1xf32>,
    } else {
    }
    %c0 = arith.constant 0 : index
    %c0_1 = arith.constant 0 : index
    %c0_2 = arith.constant 0 : index
    %3 = vector.load %arg2[%c0, %c0_1, %c0_2] : memref<2x8x32xf32, #tpu.memory_space<vmem>>, vector<2x8x32xf32>
    %c0_3 = arith.constant 0 : index
    %c0_4 = arith.constant 0 : index
    %4 = vector.load %arg3[%c0_3, %c0_4] : memref<2x8xf32, #tpu.memory_space<vmem>>, vector<2x8xf32>
    %5 = vector.shape_cast %4 : vector<2x8xf32> to vector<2x1x8xf32>
    "tpu.trace_start"() <{level = 10 : i32, message = "bqs,bsd->bqd"}> : () -> ()
    %cst = arith.constant dense<0.000000e+00> : vector<2x1x32xf32>
    %6 = tpu.matmul %5, %3, %cst {dimension_numbers = #tpu.dot_dimension_numbers<[2], [1], [1], [2], [0, 0, 0, 1, 1, 2], [0], [0]>, precision = #tpu.contract_precision<fp32>} : vector<2x1x8xf32>, vector<2x8x32xf32>, vector<2x1x32xf32> -> vector<2x1x32xf32>
    "tpu.trace_stop"() : () -> ()
    %c0_5 = arith.constant 0 : index
    %c0_6 = arith.constant 0 : index
    %7 = vector.load %arg9[%c0_5, %c0_6] : memref<2x32xf32, #tpu.memory_space<vmem>>, vector<2x32xf32>
    %8 = vector.shape_cast %6 : vector<2x1x32xf32> to vector<2x32xf32>
    %9 = arith.addf %7, %8 : vector<2x32xf32>
    %c0_7 = arith.constant 0 : index
    %c0_8 = arith.constant 0 : index
    %10 = vector.load %arg9[%c0_7, %c0_8] : memref<2x32xf32, #tpu.memory_space<vmem>>, vector<2x32xf32>
    tpu.vector_store %arg9[%c0_7, %c0_8], %9 {strides = array<i32>} : memref<2x32xf32, #tpu.memory_space<vmem>>, vector<2x32xf32>,
    %c0_9 = arith.constant 0 : index
    %c0_10 = arith.constant 0 : index
    %11 = vector.load %arg10[%c0_9, %c0_10] : memref<2x1xf32, #tpu.memory_space<vmem>>, vector<2x1xf32>
    %cst_11 = arith.constant dense<0.000000e+00> : vector<2xf32>
    %12 = vector.multi_reduction <add>, %4, %cst_11 [1] : vector<2x8xf32> to vector<2xf32>
    %13 = vector.shape_cast %12 : vector<2xf32> to vector<2x1xf32>
    %14 = arith.addf %11, %13 : vector<2x1xf32>
    %c0_12 = arith.constant 0 : index
    %c0_13 = arith.constant 0 : index
    %15 = vector.load %arg10[%c0_12, %c0_13] : memref<2x1xf32, #tpu.memory_space<vmem>>, vector<2x1xf32>
    tpu.vector_store %arg10[%c0_12, %c0_13], %14 {strides = array<i32>} : memref<2x1xf32, #tpu.memory_space<vmem>>, vector<2x1xf32>,
    %c0_i32_14 = arith.constant 0 : i32
    %16 = arith.cmpi eq, %arg1, %c0_i32_14 : i32
    %17 = arith.extui %16 : i1 to i32
    %c0_i32_15 = arith.constant 0 : i32
    %18 = arith.cmpi ne, %17, %c0_i32_15 : i32
    scf.if %18 {
      %c0_16 = arith.constant 0 : index
      %c0_17 = arith.constant 0 : index
      %19 = vector.load %arg10[%c0_16, %c0_17] : memref<2x1xf32, #tpu.memory_space<vmem>>, vector<2x1xf32>
      %20 = math.rsqrt %19 : vector<2x1xf32>
      %cst_18 = arith.constant 0.000000e+00 : f32
      %21 = vector.broadcast %cst_18 : f32 to vector<2x1xf32>
      %22 = arith.cmpf ogt, %19, %21 : vector<2x1xf32>
      %cst_19 = arith.constant 0.000000e+00 : f32
      %23 = vector.broadcast %cst_19 : f32 to vector<2x1xf32>
      %24 = arith.select %22, %20, %23 : vector<2x1xi1>, vector<2x1xf32>
      %c0_20 = arith.constant 0 : index
      %c0_21 = arith.constant 0 : index
      %25 = vector.load %arg9[%c0_20, %c0_21] : memref<2x32xf32, #tpu.memory_space<vmem>>, vector<2x32xf32>
      %26 = vector.broadcast %24 : vector<2x1xf32> to vector<2x32xf32>
      %27 = arith.mulf %25, %26 : vector<2x32xf32>
      %28 = arith.truncf %27 : vector<2x32xf32> to vector<2x32xbf16>
      %c0_22 = arith.constant 0 : index
      %c0_23 = arith.constant 0 : index
      %29 = vector.load %arg4[%c0_22, %c0_23] : memref<32x32xbf16, #tpu.memory_space<vmem>>, vector<32x32xbf16>
      %cst_24 = arith.constant dense<0.000000e+00> : vector<2x32xf32>
      %30 = tpu.matmul %28, %29, %cst_24 {dimension_numbers = #tpu.dot_dimension_numbers<[1], [0], [0], [1], [0, 0, 1, 1], [], []>} : vector<2x32xbf16>, vector<32x32xbf16>, vector<2x32xf32> -> vector<2x32xf32>
      %c0_25 = arith.constant 0 : index
      %c0_26 = arith.constant 0 : index
      %31 = vector.load %arg5[%c0_25, %c0_26] : memref<1x32xf32, #tpu.memory_space<vmem>>, vector<1x32xf32>
      %32 = vector.broadcast %31 : vector<1x32xf32> to vector<2x32xf32>
      %33 = arith.addf %30, %32 : vector<2x32xf32>
      %cst_27 = arith.constant 0.000000e+00 : f32
      %34 = vector.broadcast %cst_27 : f32 to vector<2x32xf32>
      %35 = arith.maximumf %33, %34 : vector<2x32xf32>
      %36 = arith.truncf %35 : vector<2x32xf32> to vector<2x32xbf16>
      %c0_28 = arith.constant 0 : index
      %c0_29 = arith.constant 0 : index
      %37 = vector.load %arg6[%c0_28, %c0_29] : memref<32x32xbf16, #tpu.memory_space<vmem>>, vector<32x32xbf16>
      %cst_30 = arith.constant dense<0.000000e+00> : vector<2x32xf32>
      %38 = tpu.matmul %36, %37, %cst_30 {dimension_numbers = #tpu.dot_dimension_numbers<[1], [0], [0], [1], [0, 0, 1, 1], [], []>} : vector<2x32xbf16>, vector<32x32xbf16>, vector<2x32xf32> -> vector<2x32xf32>
      %c0_31 = arith.constant 0 : index
      %c0_32 = arith.constant 0 : index
      %39 = vector.load %arg7[%c0_31, %c0_32] : memref<1x32xf32, #tpu.memory_space<vmem>>, vector<1x32xf32>
      %40 = vector.broadcast %39 : vector<1x32xf32> to vector<2x32xf32>
      %41 = arith.addf %38, %40 : vector<2x32xf32>
      %c0_33 = arith.constant 0 : index
      %c0_34 = arith.constant 0 : index
      %42 = vector.load %arg8[%c0_33, %c0_34] : memref<2x32xf32, #tpu.memory_space<vmem>>, vector<2x32xf32>
      tpu.vector_store %arg8[%c0_33, %c0_34], %41 {strides = array<i32>} : memref<2x32xf32, #tpu.memory_space<vmem>>, vector<2x32xf32>,
    } else {
    }
    return
  }
  func.func @transform_0(%arg0: i32, %arg1: i32) -> (i32, i32, i32) {
    %c0_i32 = arith.constant 0 : i32
    %c0_i32_0 = arith.constant 0 : i32
    return %arg0, %arg1, %c0_i32 : i32, i32, i32
  }
  func.func @transform_1(%arg0: i32, %arg1: i32) -> (i32, i32) {
    %c0_i32 = arith.constant 0 : i32
    return %arg0, %arg1 : i32, i32
  }
  func.func @transform_2(%arg0: i32, %arg1: i32) -> (i32, i32) {
    %c0_i32 = arith.constant 0 : i32
    %c0_i32_0 = arith.constant 0 : i32
    %c0_i32_1 = arith.constant 0 : i32
    return %c0_i32, %c0_i32_0 : i32, i32
  }
  func.func @transform_3(%arg0: i32, %arg1: i32) -> (i32, i32) {
    %c0_i32 = arith.constant 0 : i32
    %c0_i32_0 = arith.constant 0 : i32
    %c0_i32_1 = arith.constant 0 : i32
    return %c0_i32, %c0_i32_0 : i32, i32
  }
  func.func @transform_4(%arg0: i32, %arg1: i32) -> (i32, i32) {
    %c0_i32 = arith.constant 0 : i32
    %c0_i32_0 = arith.constant 0 : i32
    %c0_i32_1 = arith.constant 0 : i32
    return %c0_i32, %c0_i32_0 : i32, i32
  }
  func.func @transform_5(%arg0: i32, %arg1: i32) -> (i32, i32) {
    %c0_i32 = arith.constant 0 : i32
    %c0_i32_0 = arith.constant 0 : i32
    %c0_i32_1 = arith.constant 0 : i32
    return %c0_i32, %c0_i32_0 : i32, i32
  }
  func.func @transform_6(%arg0: i32, %arg1: i32) -> (i32, i32) {
    %c0_i32 = arith.constant 0 : i32
    %c0_i32_0 = arith.constant 0 : i32
    return %arg0, %c0_i32 : i32, i32
  }
}

module attributes {stable_mosaic.version = 11 : i64} {
  func.func @mean_pooler_kernel(%arg0: i32, %arg1: i32, %arg2: memref<2x8x32xf32, #tpu.memory_space<vmem>>, %arg3: memref<2x8xf32, #tpu.memory_space<vmem>>, %arg4: memref<32x32xbf16, #tpu.memory_space<vmem>>, %arg5: memref<1x32xf32, #tpu.memory_space<vmem>>, %arg6: memref<32x32xbf16, #tpu.memory_space<vmem>>, %arg7: memref<1x32xf32, #tpu.memory_space<vmem>>, %arg8: memref<2x32xf32, #tpu.memory_space<vmem>>, %arg9: memref<2x32xf32, #tpu.memory_space<vmem>>, %arg10: memref<2x1xf32, #tpu.memory_space<vmem>>) attributes {dimension_semantics = [#tpu.dimension_semantics<parallel>, #tpu.dimension_semantics<arbitrary>], iteration_bounds = array<i64: 1, 1>, scalar_prefetch = 0 : i64, scratch_operands = 2 : i64, tpu.core_type = #tpu.core_type<tc>, window_params = [{transform_indices = @transform_0, window_bounds = array<i64: 2, 8, 32>}, {transform_indices = @transform_1, window_bounds = array<i64: 2, 8>}, {pipeline_mode = #tpu.pipeline_mode<synchronous>, transform_indices = @transform_2, window_bounds = array<i64: 32, 32>}, {pipeline_mode = #tpu.pipeline_mode<synchronous>, transform_indices = @transform_3, window_bounds = array<i64: 1, 32>}, {pipeline_mode = #tpu.pipeline_mode<synchronous>, transform_indices = @transform_4, window_bounds = array<i64: 32, 32>}, {pipeline_mode = #tpu.pipeline_mode<synchronous>, transform_indices = @transform_5, window_bounds = array<i64: 1, 32>}, {transform_indices = @transform_6, window_bounds = array<i64: 2, 32>}]} {
    %c0_i32 = arith.constant 0 : i32
    %0 = arith.cmpi eq, %arg1, %c0_i32 : i32
    %1 = arith.extui %0 : i1 to i32
    %c0_i32_0 = arith.constant 0 : i32
    %2 = arith.cmpi ne, %1, %c0_i32_0 : i32
    scf.if %2 {
      %cst_16 = arith.constant 0.000000e+00 : f32
      %19 = vector.broadcast %cst_16 : f32 to vector<2x32xf32>
      %c0_17 = arith.constant 0 : index
      %c0_18 = arith.constant 0 : index
      %20 = vector.load %arg9[%c0_17, %c0_18] : memref<2x32xf32, #tpu.memory_space<vmem>>, vector<2x32xf32>
      tpu.vector_store %arg9[%c0_17, %c0_18], %19 {strides = array<i32>} : memref<2x32xf32, #tpu.memory_space<vmem>>, vector<2x32xf32>,
      %cst_19 = arith.constant 0.000000e+00 : f32
      %21 = vector.broadcast %cst_19 : f32 to vector<2x1xf32>
      %c0_20 = arith.constant 0 : index
      %c0_21 = arith.constant 0 : index
      %22 = vector.load %arg10[%c0_20, %c0_21] : memref<2x1xf32, #tpu.memory_space<vmem>>, vector<2x1xf32>
      tpu.vector_store %arg10[%c0_20, %c0_21], %21 {strides = array<i32>} : memref<2x1xf32, #tpu.memory_space<vmem>>, vector<2x1xf32>,
    } else {
    }
    %c0 = arith.constant 0 : index
    %c0_1 = arith.constant 0 : index
    %c0_2 = arith.constant 0 : index
    %3 = vector.load %arg2[%c0, %c0_1, %c0_2] : memref<2x8x32xf32, #tpu.memory_space<vmem>>, vector<2x8x32xf32>
    %c0_3 = arith.constant 0 : index
    %c0_4 = arith.constant 0 : index
    %4 = vector.load %arg3[%c0_3, %c0_4] : memref<2x8xf32, #tpu.memory_space<vmem>>, vector<2x8xf32>
    %5 = vector.shape_cast %4 : vector<2x8xf32> to vector<2x1x8xf32>
    "tpu.trace_start"() <{level = 10 : i32, message = "bqs,bsd->bqd"}> : () -> ()
    %cst = arith.constant dense<0.000000e+00> : vector<2x1x32xf32>
    %6 = tpu.matmul %5, %3, %cst {dimension_numbers = #tpu.dot_dimension_numbers<[2], [1], [1], [2], [0, 0, 0, 1, 1, 2], [0], [0]>, precision = #tpu.contract_precision<fp32>} : vector<2x1x8xf32>, vector<2x8x32xf32>, vector<2x1x32xf32> -> vector<2x1x32xf32>
    "tpu.trace_stop"() : () -> ()
    %c0_5 = arith.constant 0 : index
    %c0_6 = arith.constant 0 : index
    %7 = vector.load %arg9[%c0_5, %c0_6] : memref<2x32xf32, #tpu.memory_space<vmem>>, vector<2x32xf32>
    %8 = vector.shape_cast %6 : vector<2x1x32xf32> to vector<2x32xf32>
    %9 = arith.addf %7, %8 : vector<2x32xf32>
    %c0_7 = arith.constant 0 : index
    %c0_8 = arith.constant 0 : index
    %10 = vector.load %arg9[%c0_7, %c0_8] : memref<2x32xf32, #tpu.memory_space<vmem>>, vector<2x32xf32>
    tpu.vector_store %arg9[%c0_7, %c0_8], %9 {strides = array<i32>} : memref<2x32xf32, #tpu.memory_space<vmem>>, vector<2x32xf32>,
    %c0_9 = arith.constant 0 : index
    %c0_10 = arith.constant 0 : index
    %11 = vector.load %arg10[%c0_9, %c0_10] : memref<2x1xf32, #tpu.memory_space<vmem>>, vector<2x1xf32>
    %cst_11 = arith.constant dense<0.000000e+00> : vector<2xf32>
    %12 = vector.multi_reduction <add>, %4, %cst_11 [1] : vector<2x8xf32> to vector<2xf32>
    %13 = vector.shape_cast %12 : vector<2xf32> to vector<2x1xf32>
    %14 = arith.addf %11, %13 : vector<2x1xf32>
    %c0_12 = arith.constant 0 : index
    %c0_13 = arith.constant 0 : index
    %15 = vector.load %arg10[%c0_12, %c0_13] : memref<2x1xf32, #tpu.memory_space<vmem>>, vector<2x1xf32>
    tpu.vector_store %arg10[%c0_12, %c0_13], %14 {strides = array<i32>} : memref<2x1xf32, #tpu.memory_space<vmem>>, vector<2x1xf32>,
    %c0_i32_14 = arith.constant 0 : i32
    %16 = arith.cmpi eq, %arg1, %c0_i32_14 : i32
    %17 = arith.extui %16 : i1 to i32
    %c0_i32_15 = arith.constant 0 : i32
    %18 = arith.cmpi ne, %17, %c0_i32_15 : i32
    scf.if %18 {
      %c0_16 = arith.constant 0 : index
      %c0_17 = arith.constant 0 : index
      %19 = vector.load %arg10[%c0_16, %c0_17] : memref<2x1xf32, #tpu.memory_space<vmem>>, vector<2x1xf32>
      %20 = math.rsqrt %19 : vector<2x1xf32>
      %cst_18 = arith.constant 0.000000e+00 : f32
      %21 = vector.broadcast %cst_18 : f32 to vector<2x1xf32>
      %22 = arith.cmpf ogt, %19, %21 : vector<2x1xf32>
      %cst_19 = arith.constant 0.000000e+00 : f32
      %23 = vector.broadcast %cst_19 : f32 to vector<2x1xf32>
      %24 = arith.select %22, %20, %23 : vector<2x1xi1>, vector<2x1xf32>
      %c0_20 = arith.constant 0 : index
      %c0_21 = arith.constant 0 : index
      %25 = vector.load %arg9[%c0_20, %c0_21] : memref<2x32xf32, #tpu.memory_space<vmem>>, vector<2x32xf32>
      %26 = vector.broadcast %24 : vector<2x1xf32> to vector<2x32xf32>
      %27 = arith.mulf %25, %26 : vector<2x32xf32>
      %28 = arith.truncf %27 : vector<2x32xf32> to vector<2x32xbf16>
      %c0_22 = arith.constant 0 : index
      %c0_23 = arith.constant 0 : index
      %29 = vector.load %arg4[%c0_22, %c0_23] : memref<32x32xbf16, #tpu.memory_space<vmem>>, vector<32x32xbf16>
      %cst_24 = arith.constant dense<0.000000e+00> : vector<2x32xf32>
      %30 = tpu.matmul %28, %29, %cst_24 {dimension_numbers = #tpu.dot_dimension_numbers<[1], [0], [0], [1], [0, 0, 1, 1], [], []>} : vector<2x32xbf16>, vector<32x32xbf16>, vector<2x32xf32> -> vector<2x32xf32>
      %c0_25 = arith.constant 0 : index
      %c0_26 = arith.constant 0 : index
      %31 = vector.load %arg5[%c0_25, %c0_26] : memref<1x32xf32, #tpu.memory_space<vmem>>, vector<1x32xf32>
      %32 = vector.broadcast %31 : vector<1x32xf32> to vector<2x32xf32>
      %33 = arith.addf %30, %32 : vector<2x32xf32>
      %cst_27 = arith.constant 0.000000e+00 : f32
      %34 = vector.broadcast %cst_27 : f32 to vector<2x32xf32>
      %35 = arith.maximumf %33, %34 : vector<2x32xf32>
      %36 = arith.truncf %35 : vector<2x32xf32> to vector<2x32xbf16>
      %c0_28 = arith.constant 0 : index
      %c0_29 = arith.constant 0 : index
      %37 = vector.load %arg6[%c0_28, %c0_29] : memref<32x32xbf16, #tpu.memory_space<vmem>>, vector<32x32xbf16>
      %cst_30 = arith.constant dense<0.000000e+00> : vector<2x32xf32>
      %38 = tpu.matmul %36, %37, %cst_30 {dimension_numbers = #tpu.dot_dimension_numbers<[1], [0], [0], [1], [0, 0, 1, 1], [], []>} : vector<2x32xbf16>, vector<32x32xbf16>, vector<2x32xf32> -> vector<2x32xf32>
      %c0_31 = arith.constant 0 : index
      %c0_32 = arith.constant 0 : index
      %39 = vector.load %arg7[%c0_31, %c0_32] : memref<1x32xf32, #tpu.memory_space<vmem>>, vector<1x32xf32>
      %40 = vector.broadcast %39 : vector<1x32xf32> to vector<2x32xf32>
      %41 = arith.addf %38, %40 : vector<2x32xf32>
      %c0_33 = arith.constant 0 : index
      %c0_34 = arith.constant 0 : index
      %42 = vector.load %arg8[%c0_33, %c0_34] : memref<2x32xf32, #tpu.memory_space<vmem>>, vector<2x32xf32>
      tpu.vector_store %arg8[%c0_33, %c0_34], %41 {strides = array<i32>} : memref<2x32xf32, #tpu.memory_space<vmem>>, vector<2x32xf32>,
    } else {
    }
    return
  }
  func.func @transform_0(%arg0: i32, %arg1: i32) -> (i32, i32, i32) {
    %c0_i32 = arith.constant 0 : i32
    %c0_i32_0 = arith.constant 0 : i32
    return %arg0, %arg1, %c0_i32 : i32, i32, i32
  }
  func.func @transform_1(%arg0: i32, %arg1: i32) -> (i32, i32) {
    %c0_i32 = arith.constant 0 : i32
    return %arg0, %arg1 : i32, i32
  }
  func.func @transform_2(%arg0: i32, %arg1: i32) -> (i32, i32) {
    %c0_i32 = arith.constant 0 : i32
    %c0_i32_0 = arith.constant 0 : i32
    %c0_i32_1 = arith.constant 0 : i32
    return %c0_i32, %c0_i32_0 : i32, i32
  }
  func.func @transform_3(%arg0: i32, %arg1: i32) -> (i32, i32) {
    %c0_i32 = arith.constant 0 : i32
    %c0_i32_0 = arith.constant 0 : i32
    %c0_i32_1 = arith.constant 0 : i32
    return %c0_i32, %c0_i32_0 : i32, i32
  }
  func.func @transform_4(%arg0: i32, %arg1: i32) -> (i32, i32) {
    %c0_i32 = arith.constant 0 : i32
    %c0_i32_0 = arith.constant 0 : i32
    %c0_i32_1 = arith.constant 0 : i32
    return %c0_i32, %c0_i32_0 : i32, i32
  }
  func.func @transform_5(%arg0: i32, %arg1: i32) -> (i32, i32) {
    %c0_i32 = arith.constant 0 : i32
    %c0_i32_0 = arith.constant 0 : i32
    %c0_i32_1 = arith.constant 0 : i32
    return %c0_i32, %c0_i32_0 : i32, i32
  }
  func.func @transform_6(%arg0: i32, %arg1: i32) -> (i32, i32) {
    %c0_i32 = arith.constant 0 : i32
    %c0_i32_0 = arith.constant 0 : i32
    return %arg0, %c0_i32 : i32, i32
  }
}

</mosaic_0001>

<bundles_post_ra>
// kernel: tpu_custom_call.1
= control target key start
LH: loop header
LB: loop body
LE: loop exit
PB: predicated region body
PF: predicated region fallthrough
CT: control target
= control target key end

     0   :  { %11 = vsyncpa [#allocation5], 0  ;;  %s1606_s0 = inlined_call_operand.hbm [shape: f32[2,8,32], index: 0, kind: input, shape index: {}]   ;;  %s1607_s1 = inlined_call_operand.vmem [shape: f32[2,8], index: 1, kind: input, shape index: {}]   ;;  %s1608_s2 = inlined_call_operand.hbm [shape: bf16[32,32], index: 2, kind: input, shape index: {}]   ;;  %s1609_s3 = inlined_call_operand.vmem [shape: f32[1,32], index: 3, kind: input, shape index: {}]   ;;  %s1610_s4 = inlined_call_operand.hbm [shape: bf16[32,32], index: 4, kind: input, shape index: {}]   ;;  %s1611_s5 = inlined_call_operand.vmem [shape: f32[1,32], index: 5, kind: input, shape index: {}]   ;;  %s1612_s6 = inlined_call_operand.hbm [shape: f32[2,32], index: 6, kind: output, shape index: {}]  }
   0x1   :  { %12 = vsyncpa [#allocation8], 0 }
   0x2   :  { %13 = vsyncpa [#allocation6], 0  ;;  %s1429_s21 = smov [#allocation7]   ;;  %s1335_s25 = scalar_lea.hbm %s1608_s2, 256 }
   0x3   :  { %s33_s22 = sshll.u32 %s1429_s21, 4  ;;  %p1336_p0 = scmp.ne.s32.totalorder %s1608_s2, %s1335_s25  ;;  %s34_s22 = int_to_ptr.vmem [resolvable:$true] %s33_s22 }
   0x4   :  { %p1339_p1 = scmp.lt.u32.totalorder %s1335_s25, %s1608_s2 }
   0x6   :  { %p1341_p2 = pnand %p1339_p1, %p1336_p0 }
   0x8   :  { %1344 = shalt.err (!%p1341_p2)
}
   0x9   :  { %s1345_s30 = scalar_lea.vmem %s34_s22, 256  ;;  %p1350_p4 = scmp.lt.s32.totalorder %s34_s22, %s34_s22 }
   0xa   :  { %p1346_p3 = scmp.ne.s32.totalorder %s34_s22, %s1345_s30  ;;  %p1351_p5 = scmp.lt.s32.totalorder %s1345_s30, %s1345_s30 }
   0xc   :  { %p1352_p6 = por %p1351_p5, %p1350_p4 }
   0xe   :  { %p1353_p7 = pnand %p1352_p6, %p1346_p3 }
  0x10   :  { %1356 = shalt.err (!%p1353_p7)
}
  0x11   :  { %s1430_s7 = smov 64   ;;  %s1431_s8 = smov 4  }
  0x12   :  { %39 = dma.hbm_to_vmem [thread:$0]  %s1608_s2, 256, %s34_s22, [#allocation8], %s1430_s7, %s1430_s7, %s1431_s8  }
  0x13   :  { %s1432_s11 = smov [#allocation4]   ;;  %s1357_s15 = scalar_lea.hbm %s1606_s0, 256 }
  0x14   :  { %s19_s12 = sshll.u32 %s1432_s11, 4  ;;  %p1358_p8 = scmp.ne.s32.totalorder %s1606_s0, %s1357_s15  ;;  %s20_s12 = int_to_ptr.vmem [resolvable:$true] %s19_s12 }
  0x15   :  { %p1361_p9 = scmp.lt.u32.totalorder %s1357_s15, %s1606_s0 }
  0x17   :  { %p1363_p10 = pnand %p1361_p9, %p1358_p8 }
  0x19   :  { %1366 = shalt.err (!%p1363_p10)
}
  0x1a   :  { %s1367_s20 = scalar_lea.vmem %s20_s12, 256  ;;  %p1372_p12 = scmp.lt.s32.totalorder %s20_s12, %s20_s12 }
  0x1b   :  { %p1368_p11 = scmp.ne.s32.totalorder %s20_s12, %s1367_s20  ;;  %p1373_p13 = scmp.lt.s32.totalorder %s1367_s20, %s1367_s20 }
  0x1d   :  { %p1374_p0 = por %p1373_p13, %p1372_p12 }
  0x1f   :  { %p1375_p1 = pnand %p1374_p0, %p1368_p11 }
  0x21   :  { %1378 = shalt.err (!%p1375_p1)
}
  0x22   :  { %s1433_s2 = smov 128   ;;  %s1434_s21 = smov 8  }
  0x23   :  { %25 = dma.hbm_to_vmem [thread:$0]  %s1606_s0, 256, %s20_s12, [#allocation5], %s1433_s2, %s1433_s2, %s1434_s21  }
  0x24   :  { %s1435_s24 = smov [#allocation9]   ;;  %s1379_s28 = scalar_lea.hbm %s1610_s4, 256 }
  0x25   :  { %s47_s25 = sshll.u32 %s1435_s24, 4  ;;  %p1380_p2 = scmp.ne.s32.totalorder %s1610_s4, %s1379_s28  ;;  %s48_s25 = int_to_ptr.vmem [resolvable:$true] %s47_s25 }
  0x26   :  { %p1383_p3 = scmp.lt.u32.totalorder %s1379_s28, %s1610_s4 }
  0x28   :  { %p1385_p4 = pnand %p1383_p3, %p1380_p2 }
  0x2a   :  { %1388 = shalt.err (!%p1385_p4)
}
  0x2b   :  { %s1389_s11 = scalar_lea.vmem %s48_s25, 256  ;;  %p1394_p6 = scmp.lt.s32.totalorder %s48_s25, %s48_s25 }
  0x2c   :  { %p1390_p5 = scmp.ne.s32.totalorder %s48_s25, %s1389_s11  ;;  %p1395_p7 = scmp.lt.s32.totalorder %s1389_s11, %s1389_s11 }
  0x2e   :  { %p1396_p8 = por %p1395_p7, %p1394_p6 }
  0x30   :  { %p1397_p9 = pnand %p1396_p8, %p1390_p5 }
  0x32   :  { %1400 = shalt.err (!%p1397_p9)
}
  0x33   :  { %53 = dma.hbm_to_vmem [thread:$0]  %s1610_s4, 256, %s48_s25, [#allocation8], %s1430_s7, %s1430_s7, %s1431_s8  }
  0x34   :  { %1423 = dma.done.wait [#allocation5], 256  }
  0x35   :  { %1424 = vsyncadd [#allocation5], 4294967040 }
  0x36   :  { %1425 = dma.done.wait [#allocation8], 512  }
  0x37   :  { %1426 = vsyncadd [#allocation8], 4294966784  ;;  %v81_v0 = vlaneseq  ;;  %v1436_v1 = vmov 1966171168   ;;  %vm72_vm0 = vcmask 1024   ;;  %v1437_v4 = vmov 0.0  }
  0x38   :  { %v79_v2 = vunpack.c.l.s4 %v1436_v1  ;;  %1220 = vmatprep.subr.mxu0 %v1437_v4  ;;  %vm1438_vm1 = vmmov 0   ;;  %73 = vst.msk [vmem:[#allocation3] sm:$0x3] %vm72_vm0, %v1437_v4  ;;  %1250 = vmatprep.subr.mxu1 %v1437_v4  ;;  %vm1008_vm2 = vcmask 58368   ;;  %v76_v7 = vld [vmem:[%s1607_s1] sm:$0x3] }
  0x39   :  { %v82_v3 = vshrl.u32 %v81_v0, 7  ;;  %1222 = vmatprep.mubr.msk.f32.mxu0 %vm1438_vm1, %v1437_v4  ;;  %1252 = vmatprep.mubr.msk.f32.mxu1 %vm1438_vm1, %v1437_v4  ;;  %vm100_vm3 = vcmask 64512   ;;  %v74_v8 = vld [vmem:[#allocation4] sm:$0xff]  ;;  %v75_v9 = vld [vmem:[#allocation4 + $0x8] sm:$0xff]  ;;  %v1009_v10 = vsel %vm1008_vm2, %v76_v7, 0.0  ;;  %v1439_v37 = vmov 0  }
  0x3a   :  { %v80_v5 = vunpack.c.0.s8 %v79_v2  ;;  %v1529_v12 = vand.u32 4294901760, %v74_v8  ;;  %v1531_v13 = vand.u32 4294901760, %v75_v9  ;;  %1010 = vadd.xlane.f32.xlu0 %v1009_v10  ;;  %vm70_vm4 = vcmask 254976   ;;  %v1329_v41 = vld [vmem:[#allocation7] sm:$0xff]   ;;  %v1330_v45 = vld [vmem:[#allocation7 + $0x8] sm:$0xff]   ;;  %v1331_v58 = vld [vmem:[#allocation9] sm:$0xff]  }
  0x3b   :  { %1328 = vset.pattern.permute.xlu0 %v1439_v37  ;;  %71 = vst.msk [vmem:[#allocation2] sm:$0x3] %vm70_vm4, %v1437_v4  ;;  %vm1001_vm6 = vcmask 1041409   ;;  %vm1053_vm7 = vcmask 261120   ;;  %v1332_v59 = vld [vmem:[#allocation9 + $0x8] sm:$0xff]   ;;  %s1440_s15 = smov [#allocation10]  }
  0x3c   :  { %v83_v6 = vsub.s32 %v80_v5, %v82_v3  ;;  %1221 = vmatpush3.msra.mxu0 %v1529_v12  ;;  %v181_v16 = vsub.f32 %v74_v8, %v1529_v12  ;;  %1251 = vmatpush3.msra.mxu1 %v1531_v13  ;;  %v629_v17 = vsub.f32 %v75_v9, %v1531_v13  ;;  %v1182_v60 = vld [vmem:[%s1609_s3] ss:$0 sm:$0xff]  ;;  %s1172_s16 = sshll.u32 %s1440_s15, 4  ;;  %s1173_s16 = int_to_ptr.vmem [resolvable:$true] %s1172_s16 }
  0x3d   :  { %1225 = vmatprep.subr.mxu0 %v1437_v4  ;;  %1255 = vmatprep.subr.mxu1 %v1437_v4  ;;  %v1186_v5 = vld [vmem:[%s1611_s5] ss:$0 sm:$0xff]  ;;  %s1401_s3 = scalar_lea.vmem %s1173_s16, 32  ;;  %p1406_p11 = scmp.lt.s32.totalorder %s1173_s16, %s1173_s16 }
  0x3e   :  { %v84_v11 = vrot.slane %v76_v7, %v83_v6  ;;  %v182_v20 = vand.u32 4294901760, %v181_v16  ;;  %v630_v23 = vand.u32 4294901760, %v629_v17  ;;  %p1402_p10 = scmp.ne.s32.totalorder %s1173_s16, %s1401_s3  ;;  %p1407_p12 = scmp.lt.s32.totalorder %s1401_s3, %s1401_s3 }
  0x3f   :  { %v1007_v38 = vld [vmem:[#allocation3] sm:$0x3] }
  0x40   :  { %v85_v14 = vcombine.high %v84_v11, %v84_v11  ;;  %v92_v15 = vrot.slane %v84_v11, %v83_v6  ;;  %v183_v26 = vsub.f32 %v181_v16, %v182_v20  ;;  %v631_v29 = vsub.f32 %v629_v17, %v630_v23  ;;  %p1408_p13 = por %p1407_p12, %p1406_p11 }
  0x42   :  { %v99_v18 = vrot.slane %v85_v14, %v83_v6  ;;  %v101_v19 = vsel %vm100_vm3, %v92_v15, 0  ;;  %v184_v32 = vand.u32 4294901760, %v183_v26  ;;  %v632_v35 = vand.u32 4294901760, %v631_v29  ;;  %v997_v49 = vld [vmem:[#allocation2] sm:$0x3]  ;;  %p1409_p0 = pnand %p1408_p13, %p1402_p10 }
  0x43   :  { %v169_v21 = vand.u32 4294901760, %v101_v19 }
  0x44   :  { %v549_v22 = vsel %vm100_vm3, %v99_v18, 0 }
  0x45   :  { %v170_v24 = vsub.f32 %v101_v19, %v169_v21  ;;  %v617_v25 = vand.u32 4294901760, %v549_v22 }
  0x47   :  { %v618_v27 = vsub.f32 %v549_v22, %v617_v25  ;;  %v171_v28 = vand.u32 4294901760, %v170_v24 }
  0x49   :  { %v172_v30 = vsub.f32 %v170_v24, %v171_v28  ;;  %v619_v31 = vand.u32 4294901760, %v618_v27 }
  0x4b   :  { %v173_v33 = vand.u32 4294901760, %v172_v30  ;;  %v620_v34 = vsub.f32 %v618_v27, %v619_v31 }
  0x4d   :  { %1223 = vmatmul.mubr.f32.vlgmr.msra.gmra.mrb[0].mxu0 %v173_v33  ;;  %v621_v36 = vand.u32 4294901760, %v620_v34 }
  0x4e   :  { %1226 = vmatpush3.msra.mxu0 %v184_v32  ;;  %1227 = vmatprep.mubr.msk.f32.mxu0 %vm1438_vm1, %v1437_v4 }
  0x4f   :  { %1253 = vmatmul.mubr.f32.vlgmr.msra.gmra.mrb[0].mxu1 %v621_v36  ;;  %1230 = vmatprep.subr.mxu0 %v1437_v4 }
  0x50   :  { %1256 = vmatpush3.msra.mxu1 %v632_v35  ;;  %1257 = vmatprep.mubr.msk.f32.mxu1 %vm1438_vm1, %v1437_v4 }
  0x51   :  { %1260 = vmatprep.subr.mxu1 %v1437_v4 }
  0x55   :  { %1228 = vmatmul.mubr.f32.vlgmr.msra.gmra.mrb[0].mxu0 %v169_v21 }
  0x56   :  { %1231 = vmatpush3.msra.mxu0 %v181_v16  ;;  %1232 = vmatprep.mubr.msk.f32.mxu0 %vm1438_vm1, %v1437_v4 }
  0x57   :  { %1258 = vmatmul.mubr.f32.vlgmr.msra.gmra.mrb[0].mxu1 %v617_v25  ;;  %1235 = vmatprep.subr.mxu0 %v1437_v4 }
  0x58   :  { %1261 = vmatpush3.msra.mxu1 %v629_v17  ;;  %1262 = vmatprep.mubr.msk.f32.mxu1 %vm1438_vm1, %v1437_v4 }
  0x59   :  { %1265 = vmatprep.subr.mxu1 %v1437_v4 }
  0x5d   :  { %1233 = vmatmul.mubr.f32.vlgmr.msra.gmra.mrb[0].mxu0 %v170_v24 }
  0x5e   :  { %1236 = vmatpush3.msra.mxu0 %v1529_v12  ;;  %1237 = vmatprep.mubr.msk.f32.mxu0 %vm1438_vm1, %v1437_v4 }
  0x5f   :  { %1263 = vmatmul.mubr.f32.vlgmr.msra.gmra.mrb[0].mxu1 %v618_v27  ;;  %1240 = vmatprep.subr.mxu0 %v1437_v4 }
  0x60   :  { %1266 = vmatpush3.msra.mxu1 %v1531_v13  ;;  %1267 = vmatprep.mubr.msk.f32.mxu1 %vm1438_vm1, %v1437_v4 }
  0x61   :  { %1270 = vmatprep.subr.mxu1 %v1437_v4 }
  0x65   :  { %1238 = vmatmul.mubr.f32.vlgmr.msra.gmra.mrb[0].mxu0 %v171_v28 }
  0x66   :  { %1241 = vmatpush3.msra.mxu0 %v182_v20  ;;  %1242 = vmatprep.mubr.msk.f32.mxu0 %vm1438_vm1, %v1437_v4 }
  0x67   :  { %1268 = vmatmul.mubr.f32.vlgmr.msra.gmra.mrb[0].mxu1 %v619_v31  ;;  %1245 = vmatprep.subr.mxu0 %v1437_v4 }
  0x68   :  { %1271 = vmatpush3.msra.mxu1 %v630_v23  ;;  %1272 = vmatprep.mubr.msk.f32.mxu1 %vm1438_vm1, %v1437_v4 }
  0x69   :  { %1275 = vmatprep.subr.mxu1 %v1437_v4 }
  0x6d   :  { %1243 = vmatmul.mubr.f32.vlgmr.msra.gmra.mrb[0].mxu0 %v169_v21 }
  0x6e   :  { %1246 = vmatpush3.msra.mxu0 %v1529_v12  ;;  %1247 = vmatprep.mubr.msk.f32.mxu0 %vm1438_vm1, %v1437_v4 }
  0x6f   :  { %1273 = vmatmul.mubr.f32.vlgmr.msra.gmra.mrb[0].mxu1 %v617_v25  ;;  %1280 = vmatprep.subr.bf16.mxu0 %v1437_v4 }
  0x70   :  { %1276 = vmatpush3.msra.mxu1 %v1531_v13  ;;  %1277 = vmatprep.mubr.msk.f32.mxu1 %vm1438_vm1, %v1437_v4 }
  0x71   :  { %1288 = vmatprep.subr.bf16.mxu1 %v1437_v4 }
  0x75   :  { %1248 = vmatmul.mubr.f32.vlgmr.msra.gmra.mrb[0].mxu0 %v169_v21 }
  0x76   :  { %1284 = vmatprep.mubr.msk.bf16.mxu0 %vm1438_vm1, %v1437_v4  ;;  %1281 = vmatpush3.bf16.msra.mxu0 %v1329_v41 }
  0x77   :  { %1278 = vmatmul.mubr.f32.vlgmr.msra.gmra.mrb[0].mxu1 %v617_v25  ;;  %1282 = vmatprep.subr.bf16.mxu0 %v1437_v4 }
  0x78   :  { %1292 = vmatprep.mubr.msk.bf16.mxu1 %vm1438_vm1, %v1437_v4  ;;  %1289 = vmatpush3.bf16.msra.mxu1 %v1331_v58 }
  0x79   :  { %1290 = vmatprep.subr.bf16.mxu1 %v1437_v4 }
  0x7a   :  { %1283 = vmatpush3.bf16.msra.mxu0 %v1330_v45 }
  0x7c   :  { %1291 = vmatpush3.bf16.msra.mxu1 %v1332_v59 }
  0xc7   :  { %v1011_v39 = vpop.xlane.xlu0 %1010 }
  0xc8   :  { %v1012_v40 = vadd.f32 %v1011_v39, %v1007_v38 }
  0xca   :  { %1014 = vst.msk [vmem:[#allocation3] sm:$0x3] %vm72_vm0, %v1012_v40 }
  0xd1   :  { %v1018_v42 = vld [vmem:[#allocation3] sm:$0x3] }
  0xd2   :  { %1333 = vrsqrt.f32 %v1018_v42  ;;  %vm1020_vm5 = vcmp.gt.f32.partialorder %v1018_v42, 0.0 }
  0xdc   :  { %v1334_v43 = vpop.eup %1333 }
  0xdd   :  { %v1021_v44 = vsel %vm1020_vm5, %v1334_v43, 0.0 }
  0xde   :  { %1025 = vperm.xlu0 %1328, %v1021_v44  }
 0x148   :  { %v545_v46 = vpop.f32.mrb[0].mxu0 }
 0x149   :  { %v1249_v47 = vpop.f32.mrb[1].mxu0 }
 0x14a   :  { %v993_v48 = vpop.f32.mrb[0].mxu1 }
 0x14b   :  { %v1000_v50 = vrot.slane %v993_v48, 7  ;;  %v1279_v51 = vpop.f32.mrb[1].mxu1 }
 0x14d   :  { %v1002_v52 = vsel %vm1001_vm6, %v1000_v50, %v545_v46 }
 0x14e   :  { %v1004_v53 = vadd.f32 %v1002_v52, %v997_v49 }
 0x150   :  { %1006 = vst.msk [vmem:[#allocation2] sm:$0x3] %vm70_vm4, %v1004_v53 }
 0x157   :  { %v1022_v55 = vld [vmem:[#allocation2] sm:$0x3] }
 0x15d   :  { %v1026_v54 = vpop.permute.xlu0 %1025 }
 0x15e   :  { %v1028_v56 = vmul.f32 %v1026_v54, %v1022_v55 }
 0x160   :  { %v1029_v57 = vpack.c.bf16 %v1028_v56, %v1028_v56 }
 0x162   :  { %1285 = vmatmul.mubr.msk.bf16.vlgmr.msra.gmra.mrb[4].mxu0 %vm1053_vm7, %v1029_v57 }
 0x235   :  { %v1091_v61 = vpop.f32.mrb[4].mxu0 }
 0x236   :  { %v1092_v62 = vadd.f32 %v1182_v60, %v1091_v61  ;;  %v1286_v63 = vpop.f32.mrb[5].mxu0 }
 0x237   :  { %v1094_v0 = vpop.f32.mrb[6].mxu0 }
 0x238   :  { %v1097_v1 = vmax.f32 %v1092_v62, 0.0  ;;  %v1287_v2 = vpop.f32.mrb[7].mxu0 }
 0x23a   :  { %v1098_v3 = vpack.c.bf16 %v1097_v1, %v1097_v1 }
 0x23c   :  { %1293 = vmatmul.mubr.msk.bf16.vlgmr.msra.gmra.mrb[4].mxu1 %vm1053_vm7, %v1098_v3 }
 0x30f   :  { %v1159_v4 = vpop.f32.mrb[4].mxu1 }
 0x310   :  { %v1160_v6 = vadd.f32 %v1186_v5, %v1159_v4  ;;  %v1294_v7 = vpop.f32.mrb[5].mxu1 }
 0x311   :  { %v1162_v8 = vpop.f32.mrb[6].mxu1 }
 0x312   :  { %1165 = vst.msk [vmem:[#allocation10] sm:$0x3] %vm70_vm4, %v1160_v6  ;;  %v1295_v9 = vpop.f32.mrb[7].mxu1 }
 0x313   :  { %1412 = shalt.err (!%p1409_p0)
}
 0x314   :  { %s1413_s5 = scalar_lea.hbm %s1612_s6, 32 }
 0x315   :  { %p1414_p1 = scmp.ne.s32.totalorder %s1612_s6, %s1413_s5  ;;  %p1417_p2 = scmp.lt.u32.totalorder %s1413_s5, %s1612_s6 }
 0x317   :  { %p1419_p3 = pnand %p1417_p2, %p1414_p1 }
 0x319   :  { %1422 = shalt.err (!%p1419_p3)
}
 0x31a   :  { %1175 = dma.vmem_to_hbm [thread:$0]  %s1173_s16, 32, %s1612_s6, [#allocation6]  }
 0x31b   :  { %1427 = dma.done.wait [#allocation6], 32  }
 0x31c   :  { %1428 = vsyncadd [#allocation6], 4294967264 }
 0x31d   :  { %1179 = vsyncpa [#allocation5], 1 }
 0x31e   :  { %1180 = vsyncpa [#allocation8], 1 }
 0x31f   :  { %1181 = vsyncpa [#allocation6], 1 }

// kernel: tpu_custom_call.1
= control target key start
LH: loop header
LB: loop body
LE: loop exit
PB: predicated region body
PF: predicated region fallthrough
CT: control target
= control target key end

     0   :  { %11 = vsyncpa [#allocation5], 0  ;;  %s1606_s0 = inlined_call_operand.hbm [shape: f32[2,8,32], index: 0, kind: input, shape index: {}]   ;;  %s1607_s1 = inlined_call_operand.vmem [shape: f32[2,8], index: 1, kind: input, shape index: {}]   ;;  %s1608_s2 = inlined_call_operand.hbm [shape: bf16[32,32], index: 2, kind: input, shape index: {}]   ;;  %s1609_s3 = inlined_call_operand.vmem [shape: f32[1,32], index: 3, kind: input, shape index: {}]   ;;  %s1610_s4 = inlined_call_operand.hbm [shape: bf16[32,32], index: 4, kind: input, shape index: {}]   ;;  %s1611_s5 = inlined_call_operand.vmem [shape: f32[1,32], index: 5, kind: input, shape index: {}]   ;;  %s1612_s6 = inlined_call_operand.hbm [shape: f32[2,32], index: 6, kind: output, shape index: {}]  }
   0x1   :  { %12 = vsyncpa [#allocation8], 0 }
   0x2   :  { %13 = vsyncpa [#allocation6], 0  ;;  %s1429_s21 = smov [#allocation7]   ;;  %s1335_s25 = scalar_lea.hbm %s1608_s2, 256 }
   0x3   :  { %s33_s22 = sshll.u32 %s1429_s21, 4  ;;  %p1336_p0 = scmp.ne.s32.totalorder %s1608_s2, %s1335_s25  ;;  %s34_s22 = int_to_ptr.vmem [resolvable:$true] %s33_s22 }
   0x4   :  { %p1339_p1 = scmp.lt.u32.totalorder %s1335_s25, %s1608_s2 }
   0x6   :  { %p1341_p2 = pnand %p1339_p1, %p1336_p0 }
   0x8   :  { %1344 = shalt.err (!%p1341_p2)
}
   0x9   :  { %s1345_s30 = scalar_lea.vmem %s34_s22, 256  ;;  %p1350_p4 = scmp.lt.s32.totalorder %s34_s22, %s34_s22 }
   0xa   :  { %p1346_p3 = scmp.ne.s32.totalorder %s34_s22, %s1345_s30  ;;  %p1351_p5 = scmp.lt.s32.totalorder %s1345_s30, %s1345_s30 }
   0xc   :  { %p1352_p6 = por %p1351_p5, %p1350_p4 }
   0xe   :  { %p1353_p7 = pnand %p1352_p6, %p1346_p3 }
  0x10   :  { %1356 = shalt.err (!%p1353_p7)
}
  0x11   :  { %s1430_s7 = smov 64   ;;  %s1431_s8 = smov 4  }
  0x12   :  { %39 = dma.hbm_to_vmem [thread:$0]  %s1608_s2, 256, %s34_s22, [#allocation8], %s1430_s7, %s1430_s7, %s1431_s8  }
  0x13   :  { %s1432_s11 = smov [#allocation4]   ;;  %s1357_s15 = scalar_lea.hbm %s1606_s0, 256 }
  0x14   :  { %s19_s12 = sshll.u32 %s1432_s11, 4  ;;  %p1358_p8 = scmp.ne.s32.totalorder %s1606_s0, %s1357_s15  ;;  %s20_s12 = int_to_ptr.vmem [resolvable:$true] %s19_s12 }
  0x15   :  { %p1361_p9 = scmp.lt.u32.totalorder %s1357_s15, %s1606_s0 }
  0x17   :  { %p1363_p10 = pnand %p1361_p9, %p1358_p8 }
  0x19   :  { %1366 = shalt.err (!%p1363_p10)
}
  0x1a   :  { %s1367_s20 = scalar_lea.vmem %s20_s12, 256  ;;  %p1372_p12 = scmp.lt.s32.totalorder %s20_s12, %s20_s12 }
  0x1b   :  { %p1368_p11 = scmp.ne.s32.totalorder %s20_s12, %s1367_s20  ;;  %p1373_p13 = scmp.lt.s32.totalorder %s1367_s20, %s1367_s20 }
  0x1d   :  { %p1374_p0 = por %p1373_p13, %p1372_p12 }
  0x1f   :  { %p1375_p1 = pnand %p1374_p0, %p1368_p11 }
  0x21   :  { %1378 = shalt.err (!%p1375_p1)
}
  0x22   :  { %s1433_s2 = smov 128   ;;  %s1434_s21 = smov 8  }
  0x23   :  { %25 = dma.hbm_to_vmem [thread:$0]  %s1606_s0, 256, %s20_s12, [#allocation5], %s1433_s2, %s1433_s2, %s1434_s21  }
  0x24   :  { %s1435_s24 = smov [#allocation9]   ;;  %s1379_s28 = scalar_lea.hbm %s1610_s4, 256 }
  0x25   :  { %s47_s25 = sshll.u32 %s1435_s24, 4  ;;  %p1380_p2 = scmp.ne.s32.totalorder %s1610_s4, %s1379_s28  ;;  %s48_s25 = int_to_ptr.vmem [resolvable:$true] %s47_s25 }
  0x26   :  { %p1383_p3 = scmp.lt.u32.totalorder %s1379_s28, %s1610_s4 }
  0x28   :  { %p1385_p4 = pnand %p1383_p3, %p1380_p2 }
  0x2a   :  { %1388 = shalt.err (!%p1385_p4)
}
  0x2b   :  { %s1389_s11 = scalar_lea.vmem %s48_s25, 256  ;;  %p1394_p6 = scmp.lt.s32.totalorder %s48_s25, %s48_s25 }
  0x2c   :  { %p1390_p5 = scmp.ne.s32.totalorder %s48_s25, %s1389_s11  ;;  %p1395_p7 = scmp.lt.s32.totalorder %s1389_s11, %s1389_s11 }
  0x2e   :  { %p1396_p8 = por %p1395_p7, %p1394_p6 }
  0x30   :  { %p1397_p9 = pnand %p1396_p8, %p1390_p5 }
  0x32   :  { %1400 = shalt.err (!%p1397_p9)
}
  0x33   :  { %53 = dma.hbm_to_vmem [thread:$0]  %s1610_s4, 256, %s48_s25, [#allocation8], %s1430_s7, %s1430_s7, %s1431_s8  }
  0x34   :  { %1423 = dma.done.wait [#allocation5], 256  }
  0x35   :  { %1424 = vsyncadd [#allocation5], 4294967040 }
  0x36   :  { %1425 = dma.done.wait [#allocation8], 512  }
  0x37   :  { %1426 = vsyncadd [#allocation8], 4294966784  ;;  %v81_v0 = vlaneseq  ;;  %v1436_v1 = vmov 1966171168   ;;  %vm72_vm0 = vcmask 1024   ;;  %v1437_v4 = vmov 0.0  }
  0x38   :  { %v79_v2 = vunpack.c.l.s4 %v1436_v1  ;;  %1220 = vmatprep.subr.mxu0 %v1437_v4  ;;  %vm1438_vm1 = vmmov 0   ;;  %73 = vst.msk [vmem:[#allocation3] sm:$0x3] %vm72_vm0, %v1437_v4  ;;  %1250 = vmatprep.subr.mxu1 %v1437_v4  ;;  %vm1008_vm2 = vcmask 58368   ;;  %v76_v7 = vld [vmem:[%s1607_s1] sm:$0x3] }
  0x39   :  { %v82_v3 = vshrl.u32 %v81_v0, 7  ;;  %1222 = vmatprep.mubr.msk.f32.mxu0 %vm1438_vm1, %v1437_v4  ;;  %1252 = vmatprep.mubr.msk.f32.mxu1 %vm1438_vm1, %v1437_v4  ;;  %vm100_vm3 = vcmask 64512   ;;  %v74_v8 = vld [vmem:[#allocation4] sm:$0xff]  ;;  %v75_v9 = vld [vmem:[#allocation4 + $0x8] sm:$0xff]  ;;  %v1009_v10 = vsel %vm1008_vm2, %v76_v7, 0.0  ;;  %v1439_v37 = vmov 0  }
  0x3a   :  { %v80_v5 = vunpack.c.0.s8 %v79_v2  ;;  %v1529_v12 = vand.u32 4294901760, %v74_v8  ;;  %v1531_v13 = vand.u32 4294901760, %v75_v9  ;;  %1010 = vadd.xlane.f32.xlu0 %v1009_v10  ;;  %vm70_vm4 = vcmask 254976   ;;  %v1329_v41 = vld [vmem:[#allocation7] sm:$0xff]   ;;  %v1330_v45 = vld [vmem:[#allocation7 + $0x8] sm:$0xff]   ;;  %v1331_v58 = vld [vmem:[#allocation9] sm:$0xff]  }
  0x3b   :  { %1328 = vset.pattern.permute.xlu0 %v1439_v37  ;;  %71 = vst.msk [vmem:[#allocation2] sm:$0x3] %vm70_vm4, %v1437_v4  ;;  %vm1001_vm6 = vcmask 1041409   ;;  %vm1053_vm7 = vcmask 261120   ;;  %v1332_v59 = vld [vmem:[#allocation9 + $0x8] sm:$0xff]   ;;  %s1440_s15 = smov [#allocation10]  }
  0x3c   :  { %v83_v6 = vsub.s32 %v80_v5, %v82_v3  ;;  %1221 = vmatpush3.msra.mxu0 %v1529_v12  ;;  %v181_v16 = vsub.f32 %v74_v8, %v1529_v12  ;;  %1251 = vmatpush3.msra.mxu1 %v1531_v13  ;;  %v629_v17 = vsub.f32 %v75_v9, %v1531_v13  ;;  %v1182_v60 = vld [vmem:[%s1609_s3] ss:$0 sm:$0xff]  ;;  %s1172_s16 = sshll.u32 %s1440_s15, 4  ;;  %s1173_s16 = int_to_ptr.vmem [resolvable:$true] %s1172_s16 }
  0x3d   :  { %1225 = vmatprep.subr.mxu0 %v1437_v4  ;;  %1255 = vmatprep.subr.mxu1 %v1437_v4  ;;  %v1186_v5 = vld [vmem:[%s1611_s5] ss:$0 sm:$0xff]  ;;  %s1401_s3 = scalar_lea.vmem %s1173_s16, 32  ;;  %p1406_p11 = scmp.lt.s32.totalorder %s1173_s16, %s1173_s16 }
  0x3e   :  { %v84_v11 = vrot.slane %v76_v7, %v83_v6  ;;  %v182_v20 = vand.u32 4294901760, %v181_v16  ;;  %v630_v23 = vand.u32 4294901760, %v629_v17  ;;  %p1402_p10 = scmp.ne.s32.totalorder %s1173_s16, %s1401_s3  ;;  %p1407_p12 = scmp.lt.s32.totalorder %s1401_s3, %s1401_s3 }
  0x3f   :  { %v1007_v38 = vld [vmem:[#allocation3] sm:$0x3] }
  0x40   :  { %v85_v14 = vcombine.high %v84_v11, %v84_v11  ;;  %v92_v15 = vrot.slane %v84_v11, %v83_v6  ;;  %v183_v26 = vsub.f32 %v181_v16, %v182_v20  ;;  %v631_v29 = vsub.f32 %v629_v17, %v630_v23  ;;  %p1408_p13 = por %p1407_p12, %p1406_p11 }
  0x42   :  { %v99_v18 = vrot.slane %v85_v14, %v83_v6  ;;  %v101_v19 = vsel %vm100_vm3, %v92_v15, 0  ;;  %v184_v32 = vand.u32 4294901760, %v183_v26  ;;  %v632_v35 = vand.u32 4294901760, %v631_v29  ;;  %v997_v49 = vld [vmem:[#allocation2] sm:$0x3]  ;;  %p1409_p0 = pnand %p1408_p13, %p1402_p10 }
  0x43   :  { %v169_v21 = vand.u32 4294901760, %v101_v19 }
  0x44   :  { %v549_v22 = vsel %vm100_vm3, %v99_v18, 0 }
  0x45   :  { %v170_v24 = vsub.f32 %v101_v19, %v169_v21  ;;  %v617_v25 = vand.u32 4294901760, %v549_v22 }
  0x47   :  { %v618_v27 = vsub.f32 %v549_v22, %v617_v25  ;;  %v171_v28 = vand.u32 4294901760, %v170_v24 }
  0x49   :  { %v172_v30 = vsub.f32 %v170_v24, %v171_v28  ;;  %v619_v31 = vand.u32 4294901760, %v618_v27 }
  0x4b   :  { %v173_v33 = vand.u32 4294901760, %v172_v30  ;;  %v620_v34 = vsub.f32 %v618_v27, %v619_v31 }
  0x4d   :  { %1223 = vmatmul.mubr.f32.vlgmr.msra.gmra.mrb[0].mxu0 %v173_v33  ;;  %v621_v36 = vand.u32 4294901760, %v620_v34 }
  0x4e   :  { %1226 = vmatpush3.msra.mxu0 %v184_v32  ;;  %1227 = vmatprep.mubr.msk.f32.mxu0 %vm1438_vm1, %v1437_v4 }
  0x4f   :  { %1253 = vmatmul.mubr.f32.vlgmr.msra.gmra.mrb[0].mxu1 %v621_v36  ;;  %1230 = vmatprep.subr.mxu0 %v1437_v4 }
  0x50   :  { %1256 = vmatpush3.msra.mxu1 %v632_v35  ;;  %1257 = vmatprep.mubr.msk.f32.mxu1 %vm1438_vm1, %v1437_v4 }
  0x51   :  { %1260 = vmatprep.subr.mxu1 %v1437_v4 }
  0x55   :  { %1228 = vmatmul.mubr.f32.vlgmr.msra.gmra.mrb[0].mxu0 %v169_v21 }
  0x56   :  { %1231 = vmatpush3.msra.mxu0 %v181_v16  ;;  %1232 = vmatprep.mubr.msk.f32.mxu0 %vm1438_vm1, %v1437_v4 }
  0x57   :  { %1258 = vmatmul.mubr.f32.vlgmr.msra.gmra.mrb[0].mxu1 %v617_v25  ;;  %1235 = vmatprep.subr.mxu0 %v1437_v4 }
  0x58   :  { %1261 = vmatpush3.msra.mxu1 %v629_v17  ;;  %1262 = vmatprep.mubr.msk.f32.mxu1 %vm1438_vm1, %v1437_v4 }
  0x59   :  { %1265 = vmatprep.subr.mxu1 %v1437_v4 }
  0x5d   :  { %1233 = vmatmul.mubr.f32.vlgmr.msra.gmra.mrb[0].mxu0 %v170_v24 }
  0x5e   :  { %1236 = vmatpush3.msra.mxu0 %v1529_v12  ;;  %1237 = vmatprep.mubr.msk.f32.mxu0 %vm1438_vm1, %v1437_v4 }
  0x5f   :  { %1263 = vmatmul.mubr.f32.vlgmr.msra.gmra.mrb[0].mxu1 %v618_v27  ;;  %1240 = vmatprep.subr.mxu0 %v1437_v4 }
  0x60   :  { %1266 = vmatpush3.msra.mxu1 %v1531_v13  ;;  %1267 = vmatprep.mubr.msk.f32.mxu1 %vm1438_vm1, %v1437_v4 }
  0x61   :  { %1270 = vmatprep.subr.mxu1 %v1437_v4 }
  0x65   :  { %1238 = vmatmul.mubr.f32.vlgmr.msra.gmra.mrb[0].mxu0 %v171_v28 }
  0x66   :  { %1241 = vmatpush3.msra.mxu0 %v182_v20  ;;  %1242 = vmatprep.mubr.msk.f32.mxu0 %vm1438_vm1, %v1437_v4 }
  0x67   :  { %1268 = vmatmul.mubr.f32.vlgmr.msra.gmra.mrb[0].mxu1 %v619_v31  ;;  %1245 = vmatprep.subr.mxu0 %v1437_v4 }
  0x68   :  { %1271 = vmatpush3.msra.mxu1 %v630_v23  ;;  %1272 = vmatprep.mubr.msk.f32.mxu1 %vm1438_vm1, %v1437_v4 }
  0x69   :  { %1275 = vmatprep.subr.mxu1 %v1437_v4 }
  0x6d   :  { %1243 = vmatmul.mubr.f32.vlgmr.msra.gmra.mrb[0].mxu0 %v169_v21 }
  0x6e   :  { %1246 = vmatpush3.msra.mxu0 %v1529_v12  ;;  %1247 = vmatprep.mubr.msk.f32.mxu0 %vm1438_vm1, %v1437_v4 }
  0x6f   :  { %1273 = vmatmul.mubr.f32.vlgmr.msra.gmra.mrb[0].mxu1 %v617_v25  ;;  %1280 = vmatprep.subr.bf16.mxu0 %v1437_v4 }
  0x70   :  { %1276 = vmatpush3.msra.mxu1 %v1531_v13  ;;  %1277 = vmatprep.mubr.msk.f32.mxu1 %vm1438_vm1, %v1437_v4 }
  0x71   :  { %1288 = vmatprep.subr.bf16.mxu1 %v1437_v4 }
  0x75   :  { %1248 = vmatmul.mubr.f32.vlgmr.msra.gmra.mrb[0].mxu0 %v169_v21 }
  0x76   :  { %1284 = vmatprep.mubr.msk.bf16.mxu0 %vm1438_vm1, %v1437_v4  ;;  %1281 = vmatpush3.bf16.msra.mxu0 %v1329_v41 }
  0x77   :  { %1278 = vmatmul.mubr.f32.vlgmr.msra.gmra.mrb[0].mxu1 %v617_v25  ;;  %1282 = vmatprep.subr.bf16.mxu0 %v1437_v4 }
  0x78   :  { %1292 = vmatprep.mubr.msk.bf16.mxu1 %vm1438_vm1, %v1437_v4  ;;  %1289 = vmatpush3.bf16.msra.mxu1 %v1331_v58 }
  0x79   :  { %1290 = vmatprep.subr.bf16.mxu1 %v1437_v4 }
  0x7a   :  { %1283 = vmatpush3.bf16.msra.mxu0 %v1330_v45 }
  0x7c   :  { %1291 = vmatpush3.bf16.msra.mxu1 %v1332_v59 }
  0xc7   :  { %v1011_v39 = vpop.xlane.xlu0 %1010 }
  0xc8   :  { %v1012_v40 = vadd.f32 %v1011_v39, %v1007_v38 }
  0xca   :  { %1014 = vst.msk [vmem:[#allocation3] sm:$0x3] %vm72_vm0, %v1012_v40 }
  0xd1   :  { %v1018_v42 = vld [vmem:[#allocation3] sm:$0x3] }
  0xd2   :  { %1333 = vrsqrt.f32 %v1018_v42  ;;  %vm1020_vm5 = vcmp.gt.f32.partialorder %v1018_v42, 0.0 }
  0xdc   :  { %v1334_v43 = vpop.eup %1333 }
  0xdd   :  { %v1021_v44 = vsel %vm1020_vm5, %v1334_v43, 0.0 }
  0xde   :  { %1025 = vperm.xlu0 %1328, %v1021_v44  }
 0x148   :  { %v545_v46 = vpop.f32.mrb[0].mxu0 }
 0x149   :  { %v1249_v47 = vpop.f32.mrb[1].mxu0 }
 0x14a   :  { %v993_v48 = vpop.f32.mrb[0].mxu1 }
 0x14b   :  { %v1000_v50 = vrot.slane %v993_v48, 7  ;;  %v1279_v51 = vpop.f32.mrb[1].mxu1 }
 0x14d   :  { %v1002_v52 = vsel %vm1001_vm6, %v1000_v50, %v545_v46 }
 0x14e   :  { %v1004_v53 = vadd.f32 %v1002_v52, %v997_v49 }
 0x150   :  { %1006 = vst.msk [vmem:[#allocation2] sm:$0x3] %vm70_vm4, %v1004_v53 }
 0x157   :  { %v1022_v55 = vld [vmem:[#allocation2] sm:$0x3] }
 0x15d   :  { %v1026_v54 = vpop.permute.xlu0 %1025 }
 0x15e   :  { %v1028_v56 = vmul.f32 %v1026_v54, %v1022_v55 }
 0x160   :  { %v1029_v57 = vpack.c.bf16 %v1028_v56, %v1028_v56 }
 0x162   :  { %1285 = vmatmul.mubr.msk.bf16.vlgmr.msra.gmra.mrb[4].mxu0 %vm1053_vm7, %v1029_v57 }
 0x235   :  { %v1091_v61 = vpop.f32.mrb[4].mxu0 }
 0x236   :  { %v1092_v62 = vadd.f32 %v1182_v60, %v1091_v61  ;;  %v1286_v63 = vpop.f32.mrb[5].mxu0 }
 0x237   :  { %v1094_v0 = vpop.f32.mrb[6].mxu0 }
 0x238   :  { %v1097_v1 = vmax.f32 %v1092_v62, 0.0  ;;  %v1287_v2 = vpop.f32.mrb[7].mxu0 }
 0x23a   :  { %v1098_v3 = vpack.c.bf16 %v1097_v1, %v1097_v1 }
 0x23c   :  { %1293 = vmatmul.mubr.msk.bf16.vlgmr.msra.gmra.mrb[4].mxu1 %vm1053_vm7, %v1098_v3 }
 0x30f   :  { %v1159_v4 = vpop.f32.mrb[4].mxu1 }
 0x310   :  { %v1160_v6 = vadd.f32 %v1186_v5, %v1159_v4  ;;  %v1294_v7 = vpop.f32.mrb[5].mxu1 }
 0x311   :  { %v1162_v8 = vpop.f32.mrb[6].mxu1 }
 0x312   :  { %1165 = vst.msk [vmem:[#allocation10] sm:$0x3] %vm70_vm4, %v1160_v6  ;;  %v1295_v9 = vpop.f32.mrb[7].mxu1 }
 0x313   :  { %1412 = shalt.err (!%p1409_p0)
}
 0x314   :  { %s1413_s5 = scalar_lea.hbm %s1612_s6, 32 }
 0x315   :  { %p1414_p1 = scmp.ne.s32.totalorder %s1612_s6, %s1413_s5  ;;  %p1417_p2 = scmp.lt.u32.totalorder %s1413_s5, %s1612_s6 }
 0x317   :  { %p1419_p3 = pnand %p1417_p2, %p1414_p1 }
 0x319   :  { %1422 = shalt.err (!%p1419_p3)
}
 0x31a   :  { %1175 = dma.vmem_to_hbm [thread:$0]  %s1173_s16, 32, %s1612_s6, [#allocation6]  }
 0x31b   :  { %1427 = dma.done.wait [#allocation6], 32  }
 0x31c   :  { %1428 = vsyncadd [#allocation6], 4294967264 }
 0x31d   :  { %1179 = vsyncpa [#allocation5], 1 }
 0x31e   :  { %1180 = vsyncpa [#allocation8], 1 }
 0x31f   :  { %1181 = vsyncpa [#allocation6], 1 }

</bundles_post_ra>
